<compile_context>
chip_gen: v5e
topology: v5e:2x2
jax: 0.10.0
libtpu: 0.0.40
codegen_flags: <defaults>
</compile_context>

<pallas_src>
import functools

import jax
import jax.numpy as jnp
from jax.experimental import pallas as pl
from jax.experimental.pallas import tpu as pltpu


def _round_up(x, m):
    return (x + m - 1) // m * m


def _actor_mlp_kernel(x_ref, w1_ref, b1_ref, w2_ref, b2_ref, w3_ref, b3_ref,
                      o_ref):
    """Fused 3-layer MLP forward, transposed layout (features x batch_tile).

    x_ref : (obs_dim, tile)       w1_ref: (hidden, obs_dim)   b1_ref: (hidden, 1)
    w2_ref: (hidden, hidden)      b2_ref: (hidden, 1)
    w3_ref: (act_dim, hidden)     b3_ref: (act_dim, 1)
    o_ref : (act_dim, tile)
    """
    cdt = w1_ref.dtype                       # compute dtype for the MXU dots
    x = x_ref[...]                           # (obs_dim, tile), batch on lanes

    # Layer 1 + ReLU (accumulate in f32, elementwise in f32 -> v5e safe)
    h = jnp.dot(w1_ref[...], x, preferred_element_type=jnp.float32)
    h = jnp.maximum(h + b1_ref[...], 0.0).astype(cdt)        # (hidden, tile)

    # Layer 2 + ReLU
    h = jnp.dot(w2_ref[...], h, preferred_element_type=jnp.float32)
    h = jnp.maximum(h + b2_ref[...], 0.0).astype(cdt)        # (hidden, tile)

    # Output layer (no activation); lane-dense store (tile on the lane axis)
    out = jnp.dot(w3_ref[...], h, preferred_element_type=jnp.float32)
    o_ref[...] = (out + b3_ref[...]).astype(o_ref.dtype)     # (act_dim, tile)


def continuous_mlp_actor_forward(obs, params, *, batch_tile=None,
                                 compute_dtype=jnp.float32):
    """Forward pass of ContinuousMLPActor.

    obs:    (B, obs_dim) float32.
    params: dict with w1 (obs_dim,h), b1 (1,h), w2 (h,h), b2 (1,h),
            w3 (h,act_dim), b3 (1,act_dim)  -- i.e. y = x @ W + b storage.
    compute_dtype: jnp.float32 (default) or jnp.bfloat16 (v6e/v7x fast path).
    Returns (B, act_dim) float32.
    """
    w1, b1 = params["w1"], params["b1"]
    w2, b2 = params["w2"], params["b2"]
    w3, b3 = params["w3"], params["b3"]
    B, obs_dim = obs.shape
    hidden = w1.shape[1]
    act_dim = w3.shape[1]

    # ---- batch tiling: big lane-aligned tiles; >=2 grid steps when B is large
    if batch_tile is None:
        if B <= 128:
            batch_tile = B                       # single full block, no padding
        else:
            batch_tile = min(_round_up(pl.cdiv(B, 2), 128), 512)
    else:
        batch_tile = min(_round_up(batch_tile, 128), _round_up(B, 128))
    B_pad = _round_up(B, batch_tile)
    grid = (B_pad // batch_tile,)

    # ---- wrapper-level layout plumbing: transpose so batch is on lanes
    x_t = obs.T                                   # (obs_dim, B)
    if B_pad != B:
        x_t = jnp.pad(x_t, ((0, 0), (0, B_pad - B)))
    x_t = x_t.astype(compute_dtype)

    w1_t = w1.T.astype(compute_dtype)             # (hidden, obs_dim)
    w2_t = w2.T.astype(compute_dtype)             # (hidden, hidden)
    w3_t = w3.T.astype(compute_dtype)             # (act_dim, hidden)
    b1_c = b1.reshape(hidden, 1).astype(jnp.float32)
    b2_c = b2.reshape(hidden, 1).astype(jnp.float32)
    b3_c = b3.reshape(act_dim, 1).astype(jnp.float32)

    # ---- cost estimate (advisory)
    in_itemsize = jnp.dtype(compute_dtype).itemsize
    flops = 2 * B_pad * (obs_dim * hidden + hidden * hidden + hidden * act_dim)
    bytes_accessed = (
        B_pad * obs_dim * in_itemsize            # streamed obs
        + B_pad * act_dim * 4                    # streamed output (f32)
        + (w1_t.size + w2_t.size + w3_t.size) * in_itemsize
        + (b1_c.size + b2_c.size + b3_c.size) * 4)

    full = lambda a: pl.BlockSpec(a.shape, lambda i: (0, 0))  # resident block

    out_t = pl.pallas_call(
        _actor_mlp_kernel,
        out_shape=jax.ShapeDtypeStruct((act_dim, B_pad), jnp.float32),
        grid_spec=pltpu.PrefetchScalarGridSpec(
            num_scalar_prefetch=0,
            grid=grid,
            in_specs=[
                pl.BlockSpec((obs_dim, batch_tile), lambda i: (0, i)),  # obs^T
                full(w1_t), full(b1_c),
                full(w2_t), full(b2_c),
                full(w3_t), full(b3_c),
            ],
            out_specs=pl.BlockSpec((act_dim, batch_tile), lambda i: (0, i)),
        ),
        compiler_params=pltpu.CompilerParams(
            dimension_semantics=("parallel",)),
        cost_estimate=pl.CostEstimate(
            flops=int(flops), transcendentals=0,
            bytes_accessed=int(bytes_accessed)),
    )(x_t, w1_t, b1_c, w2_t, b2_c, w3_t, b3_c)

    # back to row-major (B, act_dim), drop batch padding
    return out_t[:, :B].T


def init_actor_params(key, obs_dim, act_dim, hidden=32, ortho_init=True,
                      output_gain=1.0):
    """Synthetic parameter init mirroring ContinuousMLPActor.reset_parameters.

    ortho_init=True -> orthogonal weights (gain=1 hidden, output_gain last),
    zero biases, matching `weight_init` in the reference module.
    """
    k1, k2, k3 = jax.random.split(key, 3)
    ortho = jax.nn.initializers.orthogonal
    if ortho_init:
        w1 = ortho(1.0)(k1, (obs_dim, hidden), jnp.float32)
        w2 = ortho(1.0)(k2, (hidden, hidden), jnp.float32)
        w3 = ortho(output_gain)(k3, (hidden, act_dim), jnp.float32)
    else:
        # PyTorch default Linear init: U(-1/sqrt(fan_in), 1/sqrt(fan_in))
        def u(k, shape, fan_in):
            lim = 1.0 / jnp.sqrt(fan_in)
            return jax.random.uniform(k, shape, jnp.float32, -lim, lim)
        w1 = u(k1, (obs_dim, hidden), obs_dim)
        w2 = u(k2, (hidden, hidden), hidden)
        w3 = u(k3, (hidden, act_dim), hidden)
    return {
        "w1": w1, "b1": jnp.zeros((1, hidden), jnp.float32),
        "w2": w2, "b2": jnp.zeros((1, hidden), jnp.float32),
        "w3": w3, "b3": jnp.zeros((1, act_dim), jnp.float32),
    }


def _reference_forward(obs, p):
    h = jnp.maximum(obs @ p["w1"] + p["b1"], 0.0)
    h = jnp.maximum(h @ p["w2"] + p["b2"], 0.0)
    return h @ p["w3"] + p["b3"]


if __name__ == "__main__":
    key = jax.random.PRNGKey(0)
    k_obs, k_params, k_obs2 = jax.random.split(key, 3)

    batch, obs_dim, act_dim, hidden = 16, 16, 8, 32
    params = init_actor_params(k_params, obs_dim, act_dim, hidden=hidden,
                               ortho_init=True, output_gain=1.0)

    # --- small batch: single full-batch block (grid of 1) ---
    obs = jax.random.normal(k_obs, (batch, obs_dim), jnp.float32)
    out = continuous_mlp_actor_forward(obs, params)
    out = jax.block_until_ready(out)
    ref = _reference_forward(obs, params)
    assert out.shape == (batch, act_dim)
    assert jnp.allclose(out, ref, atol=1e-5, rtol=1e-5), "mismatch (small batch)"

    # --- larger ragged batch: exercises batch padding + >=2 parallel grid steps
    big_batch = 1000
    obs_big = jax.random.normal(k_obs2, (big_batch, obs_dim), jnp.float32)
    out_big = continuous_mlp_actor_forward(obs_big, params)
    out_big = jax.block_until_ready(out_big)
    ref_big = _reference_forward(obs_big, params)
    assert out_big.shape == (big_batch, act_dim)
    assert jnp.allclose(out_big, ref_big, atol=1e-4, rtol=1e-4), "mismatch (big batch)"

    print("KERNEL_OK")
</pallas_src>

<mosaic_0001>
module attributes {stable_mosaic.version = 11 : i64} {
  func.func @_actor_mlp_kernel(%arg0: i32, %arg1: memref<16x16xf32, #tpu.memory_space<vmem>>, %arg2: memref<32x16xf32, #tpu.memory_space<vmem>>, %arg3: memref<32x1xf32, #tpu.memory_space<vmem>>, %arg4: memref<32x32xf32, #tpu.memory_space<vmem>>, %arg5: memref<32x1xf32, #tpu.memory_space<vmem>>, %arg6: memref<8x32xf32, #tpu.memory_space<vmem>>, %arg7: memref<8x1xf32, #tpu.memory_space<vmem>>, %arg8: memref<8x16xf32, #tpu.memory_space<vmem>>) attributes {dimension_semantics = [#tpu.dimension_semantics<parallel>], iteration_bounds = array<i64: 1>, scalar_prefetch = 0 : i64, scratch_operands = 0 : i64, tpu.core_type = #tpu.core_type<tc>, window_params = [{transform_indices = @transform_0, window_bounds = array<i64: 16, 16>}, {pipeline_mode = #tpu.pipeline_mode<synchronous>, transform_indices = @transform_1, window_bounds = array<i64: 32, 16>}, {pipeline_mode = #tpu.pipeline_mode<synchronous>, transform_indices = @transform_2, window_bounds = array<i64: 32, 1>}, {pipeline_mode = #tpu.pipeline_mode<synchronous>, transform_indices = @transform_3, window_bounds = array<i64: 32, 32>}, {pipeline_mode = #tpu.pipeline_mode<synchronous>, transform_indices = @transform_4, window_bounds = array<i64: 32, 1>}, {pipeline_mode = #tpu.pipeline_mode<synchronous>, transform_indices = @transform_5, window_bounds = array<i64: 8, 32>}, {pipeline_mode = #tpu.pipeline_mode<synchronous>, transform_indices = @transform_6, window_bounds = array<i64: 8, 1>}, {transform_indices = @transform_7, window_bounds = array<i64: 8, 16>}]} {
    %c0 = arith.constant 0 : index
    %c0_0 = arith.constant 0 : index
    %0 = vector.load %arg1[%c0, %c0_0] : memref<16x16xf32, #tpu.memory_space<vmem>>, vector<16x16xf32>
    %c0_1 = arith.constant 0 : index
    %c0_2 = arith.constant 0 : index
    %1 = vector.load %arg2[%c0_1, %c0_2] : memref<32x16xf32, #tpu.memory_space<vmem>>, vector<32x16xf32>
    %cst = arith.constant dense<0.000000e+00> : vector<32x16xf32>
    %2 = tpu.matmul %1, %0, %cst {dimension_numbers = #tpu.dot_dimension_numbers<[1], [0], [0], [1], [0, 0, 1, 1], [], []>} : vector<32x16xf32>, vector<16x16xf32>, vector<32x16xf32> -> vector<32x16xf32>
    %c0_3 = arith.constant 0 : index
    %c0_4 = arith.constant 0 : index
    %3 = vector.load %arg3[%c0_3, %c0_4] : memref<32x1xf32, #tpu.memory_space<vmem>>, vector<32x1xf32>
    %4 = vector.broadcast %3 : vector<32x1xf32> to vector<32x16xf32>
    %5 = arith.addf %2, %4 : vector<32x16xf32>
    %cst_5 = arith.constant 0.000000e+00 : f32
    %6 = vector.broadcast %cst_5 : f32 to vector<32x16xf32>
    %7 = arith.maximumf %5, %6 : vector<32x16xf32>
    %c0_6 = arith.constant 0 : index
    %c0_7 = arith.constant 0 : index
    %8 = vector.load %arg4[%c0_6, %c0_7] : memref<32x32xf32, #tpu.memory_space<vmem>>, vector<32x32xf32>
    %cst_8 = arith.constant dense<0.000000e+00> : vector<32x16xf32>
    %9 = tpu.matmul %8, %7, %cst_8 {dimension_numbers = #tpu.dot_dimension_numbers<[1], [0], [0], [1], [0, 0, 1, 1], [], []>} : vector<32x32xf32>, vector<32x16xf32>, vector<32x16xf32> -> vector<32x16xf32>
    %c0_9 = arith.constant 0 : index
    %c0_10 = arith.constant 0 : index
    %10 = vector.load %arg5[%c0_9, %c0_10] : memref<32x1xf32, #tpu.memory_space<vmem>>, vector<32x1xf32>
    %11 = vector.broadcast %10 : vector<32x1xf32> to vector<32x16xf32>
    %12 = arith.addf %9, %11 : vector<32x16xf32>
    %cst_11 = arith.constant 0.000000e+00 : f32
    %13 = vector.broadcast %cst_11 : f32 to vector<32x16xf32>
    %14 = arith.maximumf %12, %13 : vector<32x16xf32>
    %c0_12 = arith.constant 0 : index
    %c0_13 = arith.constant 0 : index
    %15 = vector.load %arg6[%c0_12, %c0_13] : memref<8x32xf32, #tpu.memory_space<vmem>>, vector<8x32xf32>
    %cst_14 = arith.constant dense<0.000000e+00> : vector<8x16xf32>
    %16 = tpu.matmul %15, %14, %cst_14 {dimension_numbers = #tpu.dot_dimension_numbers<[1], [0], [0], [1], [0, 0, 1, 1], [], []>} : vector<8x32xf32>, vector<32x16xf32>, vector<8x16xf32> -> vector<8x16xf32>
    %c0_15 = arith.constant 0 : index
    %c0_16 = arith.constant 0 : index
    %17 = vector.load %arg7[%c0_15, %c0_16] : memref<8x1xf32, #tpu.memory_space<vmem>>, vector<8x1xf32>
    %18 = vector.broadcast %17 : vector<8x1xf32> to vector<8x16xf32>
    %19 = arith.addf %16, %18 : vector<8x16xf32>
    %c0_17 = arith.constant 0 : index
    %c0_18 = arith.constant 0 : index
    %20 = vector.load %arg8[%c0_17, %c0_18] : memref<8x16xf32, #tpu.memory_space<vmem>>, vector<8x16xf32>
    tpu.vector_store %arg8[%c0_17, %c0_18], %19 {strides = array<i32>} : memref<8x16xf32, #tpu.memory_space<vmem>>, vector<8x16xf32>,
    return
  }
  func.func @transform_0(%arg0: i32) -> (i32, i32) {
    %c0_i32 = arith.constant 0 : i32
    %c0_i32_0 = arith.constant 0 : i32
    return %c0_i32, %arg0 : i32, i32
  }
  func.func @transform_1(%arg0: i32) -> (i32, i32) {
    %c0_i32 = arith.constant 0 : i32
    %c0_i32_0 = arith.constant 0 : i32
    %c0_i32_1 = arith.constant 0 : i32
    return %c0_i32, %c0_i32_0 : i32, i32
  }
  func.func @transform_2(%arg0: i32) -> (i32, i32) {
    %c0_i32 = arith.constant 0 : i32
    %c0_i32_0 = arith.constant 0 : i32
    %c0_i32_1 = arith.constant 0 : i32
    return %c0_i32, %c0_i32_0 : i32, i32
  }
  func.func @transform_3(%arg0: i32) -> (i32, i32) {
    %c0_i32 = arith.constant 0 : i32
    %c0_i32_0 = arith.constant 0 : i32
    %c0_i32_1 = arith.constant 0 : i32
    return %c0_i32, %c0_i32_0 : i32, i32
  }
  func.func @transform_4(%arg0: i32) -> (i32, i32) {
    %c0_i32 = arith.constant 0 : i32
    %c0_i32_0 = arith.constant 0 : i32
    %c0_i32_1 = arith.constant 0 : i32
    return %c0_i32, %c0_i32_0 : i32, i32
  }
  func.func @transform_5(%arg0: i32) -> (i32, i32) {
    %c0_i32 = arith.constant 0 : i32
    %c0_i32_0 = arith.constant 0 : i32
    %c0_i32_1 = arith.constant 0 : i32
    return %c0_i32, %c0_i32_0 : i32, i32
  }
  func.func @transform_6(%arg0: i32) -> (i32, i32) {
    %c0_i32 = arith.constant 0 : i32
    %c0_i32_0 = arith.constant 0 : i32
    %c0_i32_1 = arith.constant 0 : i32
    return %c0_i32, %c0_i32_0 : i32, i32
  }
  func.func @transform_7(%arg0: i32) -> (i32, i32) {
    %c0_i32 = arith.constant 0 : i32
    %c0_i32_0 = arith.constant 0 : i32
    return %c0_i32, %arg0 : i32, i32
  }
}

</mosaic_0001>

<bundles_post_ra>
// kernel: tpu_custom_call.1
= control target key start
LH: loop header
LB: loop body
LE: loop exit
PB: predicated region body
PF: predicated region fallthrough
CT: control target
= control target key end

     0   :  { %vm57_vm0 = vcmask 130048   ;;  %v274_v3 = vmov 0   ;;  %s389_s0 = inlined_call_operand.vmem [shape: f32[16,16], index: 0, kind: input, shape index: {}]   ;;  %s390_s1 = inlined_call_operand.vmem [shape: f32[32,16], index: 1, kind: input, shape index: {}]   ;;  %s391_s2 = inlined_call_operand.vmem [shape: f32[32,1], index: 2, kind: input, shape index: {}]   ;;  %s392_s3 = inlined_call_operand.vmem [shape: f32[32,32], index: 3, kind: input, shape index: {}]   ;;  %s393_s4 = inlined_call_operand.vmem [shape: f32[32,1], index: 4, kind: input, shape index: {}]   ;;  %s394_s5 = inlined_call_operand.vmem [shape: f32[8,32], index: 5, kind: input, shape index: {}]   ;;  %s395_s6 = inlined_call_operand.vmem [shape: f32[8,1], index: 6, kind: input, shape index: {}]   ;;  %s396_s7 = inlined_call_operand.hbm [shape: f32[8,16], index: 7, kind: output, shape index: {}]  }
   0x1   :  { %v28_v0 = vld [vmem:[%s389_s0 + $0x8] sm:$0xff]  ;;  %v27_v1 = vld [vmem:[%s389_s0] sm:$0xff]  ;;  %246 = vset.pattern.permute.xlu1 %v274_v3  ;;  %v36_v4 = vld [vmem:[%s391_s2 + $0x18] sm:$0xff]  ;;  %245 = vset.pattern.permute.xlu0 %v274_v3 }
   0x2   :  { %84 = vmatpush.msra.mxu0 %v28_v0  ;;  %v29_v2 = vld [vmem:[%s390_s1] sm:$0xff]  ;;  %v34_v5 = vld [vmem:[%s391_s2 + $0x8] sm:$0xff]  ;;  %54 = vperm.xlu0 %245, %v36_v4   ;;  %v32_v6 = vld [vmem:[%s390_s1 + $0x18] sm:$0xff] }
   0x3   :  { %44 = vperm.xlu1 %246, %v34_v5   ;;  %233 = vmatpush.msra.mxu1 %v28_v0 }
   0x4   :  { %85 = vmatpush.msra.mxu0 %v27_v1 }
   0x5   :  { %224 = vmatmul.msk.f32.vlgmr.msra.gmra.mxu0 %vm57_vm0, %v29_v2 }
   0x6   :  { %12 = vsyncpa [#allocation3], 0  ;;  %247 = vset.pattern.permute.xlu2 %v274_v3  ;;  %234 = vmatpush.msra.mxu1 %v27_v1  ;;  %v33_v7 = vld [vmem:[%s391_s2] sm:$0xff]  ;;  %v35_v8 = vld [vmem:[%s391_s2 + $0x10] sm:$0xff]  ;;  %vm131_vm1 = vcmask 261120   ;;  %s275_s11 = smov [#allocation2]  }
   0x7   :  { %227 = vmatmul.msk.f32.vlgmr.msra.gmra.mxu1 %vm57_vm0, %v32_v6  ;;  %v30_v9 = vld [vmem:[%s390_s1 + $0x8] sm:$0xff]  ;;  %v107_v10 = vld [vmem:[%s393_s4] sm:$0xff]  ;;  %v31_v12 = vld [vmem:[%s390_s1 + $0x10] sm:$0xff]  ;;  %s213_s12 = sshll.u32 %s275_s11, 4  ;;  %s215_s15 = sshll.u32 %s396_s7, 4  ;;  %s214_s12 = int_to_ptr.vmem [resolvable:$true] %s213_s12  ;;  %s216_s15 = int_to_ptr.hbm [resolvable:$true] %s215_s15 }
   0x8   :  { %v108_v11 = vld [vmem:[%s393_s4 + $0x8] sm:$0xff]  ;;  %v110_v16 = vld [vmem:[%s393_s4 + $0x18] sm:$0xff]  ;;  %v109_v21 = vld [vmem:[%s393_s4 + $0x10] sm:$0xff] }
   0x9   :  { %128 = vperm.xlu2 %247, %v110_v16   ;;  %v178_v27 = vld [vmem:[%s395_s6] sm:$0xff]  ;;  %v104_v33 = vld [vmem:[%s392_s3 + $0x8] sm:$0xff]  ;;  %v105_v34 = vld [vmem:[%s392_s3 + $0x10] sm:$0xff] }
   0xa   :  { %49 = vperm.xlu0 %245, %v35_v8   ;;  %v103_v32 = vld [vmem:[%s392_s3] sm:$0xff]  ;;  %v106_v35 = vld [vmem:[%s392_s3 + $0x18] sm:$0xff] }
   0xb   :  { %39 = vperm.xlu1 %246, %v33_v7   ;;  %v177_v52 = vld [vmem:[%s394_s5] sm:$0xff] }
   0xd   :  { %225 = vmatmul.msk.f32.gmra.mxu0 %vm57_vm0, %v30_v9 }
  0x11   :  { %123 = vperm.xlu2 %247, %v109_v21  }
  0x12   :  { %118 = vperm.xlu0 %245, %v108_v11  }
  0x13   :  { %113 = vperm.xlu1 %246, %v107_v10  }
  0x15   :  { %226 = vmatmul.msk.f32.gmra.mxu0 %vm57_vm0, %v31_v12 }
  0x19   :  { %181 = vperm.xlu2 %247, %v178_v27  }
  0x63   :  { %v129_v36 = vpop.permute.xlu2 %128 }
  0x6b   :  { %v124_v38 = vpop.permute.xlu2 %123 }
  0x73   :  { %v182_v53 = vpop.permute.xlu2 %181 }
  0x74   :  { %v55_v14 = vpop.permute.xlu0 %54 }
  0x75   :  { %v45_v18 = vpop.permute.xlu1 %44 }
  0x7c   :  { %v50_v23 = vpop.permute.xlu0 %49 }
  0x7d   :  { %v40_v22 = vpop.permute.xlu1 %39 }
  0x82   :  { %v87_v13 = vpop.f32.mrf.mxu0 }
  0x83   :  { %v88_v28 = vadd.f32 %v87_v13, %v40_v22 }
  0x84   :  { %v96_v15 = vpop.f32.mrf.mxu1  ;;  %v119_v43 = vpop.permute.xlu0 %118 }
  0x85   :  { %v97_v17 = vadd.f32 %v96_v15, %v55_v14  ;;  %v99_v31 = vmax.f32 %v88_v28, 0.0  ;;  %v114_v47 = vpop.permute.xlu1 %113 }
  0x87   :  { %v102_v19 = vmax.f32 %v97_v17, 0.0 }
  0x89   :  { %156 = vmatpush.msrb.mxu1 %v102_v19  ;;  %235 = vmatpush.msra.mxu2 %v102_v19 }
  0x8a   :  { %v90_v20 = vpop.f32.mrf.mxu0  ;;  %236 = vmatpush.msra.mxu3 %v102_v19 }
  0x8b   :  { %v91_v25 = vadd.f32 %v90_v20, %v45_v18 }
  0x8d   :  { %v100_v30 = vmax.f32 %v91_v25, 0.0 }
  0x92   :  { %v93_v24 = vpop.f32.mrf.mxu0 }
  0x93   :  { %v94_v26 = vadd.f32 %v93_v24, %v50_v23 }
  0x95   :  { %v101_v29 = vmax.f32 %v94_v26, 0.0 }
  0x97   :  { %157 = vmatpush.msrb.mxu1 %v101_v29  ;;  %237 = vmatpush.msra.mxu2 %v101_v29 }
  0x98   :  { %238 = vmatpush.msra.mxu3 %v101_v29 }
  0x99   :  { %158 = vmatpush.msrb.mxu1 %v100_v30  ;;  %239 = vmatpush.msra.mxu2 %v100_v30 }
  0x9a   :  { %240 = vmatpush.msra.mxu3 %v100_v30 }
  0x9b   :  { %159 = vmatpush.msrb.mxu1 %v99_v31  ;;  %241 = vmatpush.msra.mxu2 %v99_v31 }
  0x9c   :  { %242 = vmatpush.msra.mxu3 %v99_v31  ;;  %228 = vmatmul.msk.f32.vlgmr.msrb.gmra.mxu1 %vm131_vm1, %v103_v32 }
  0x9d   :  { %229 = vmatmul.msk.f32.vlgmr.msra.gmra.mxu2 %vm131_vm1, %v104_v33  ;;  %230 = vmatmul.msk.f32.vlgmr.msra.gmra.mxu3 %vm131_vm1, %v105_v34 }
  0xa5   :  { %231 = vmatmul.msk.f32.gmra.mxu3 %vm131_vm1, %v106_v35 }
 0x119   :  { %v161_v44 = vpop.f32.mrf.mxu1 }
 0x11a   :  { %v162_v48 = vadd.f32 %v161_v44, %v114_v47 }
 0x11c   :  { %v173_v51 = vmax.f32 %v162_v48, 0.0 }
 0x120   :  { %v167_v37 = vpop.f32.mrf.mxu3  ;;  %v164_v39 = vpop.f32.mrf.mxu2 }
 0x121   :  { %v168_v41 = vadd.f32 %v167_v37, %v124_v38  ;;  %v165_v45 = vadd.f32 %v164_v39, %v119_v43 }
 0x123   :  { %v175_v49 = vmax.f32 %v168_v41, 0.0  ;;  %v174_v50 = vmax.f32 %v165_v45, 0.0 }
 0x128   :  { %v170_v40 = vpop.f32.mrf.mxu3 }
 0x129   :  { %v171_v42 = vadd.f32 %v170_v40, %v129_v36 }
 0x12b   :  { %v176_v46 = vmax.f32 %v171_v42, 0.0 }
 0x12d   :  { %199 = vmatpush.msrb.mxu2 %v176_v46 }
 0x12f   :  { %200 = vmatpush.msrb.mxu2 %v175_v49 }
 0x131   :  { %201 = vmatpush.msrb.mxu2 %v174_v50 }
 0x133   :  { %202 = vmatpush.msrb.mxu2 %v173_v51 }
 0x134   :  { %232 = vmatmul.msk.f32.vlgmr.msrb.gmra.mxu2 %vm131_vm1, %v177_v52 }
 0x1b7   :  { %v204_v54 = vpop.f32.mrf.mxu2 }
 0x1b8   :  { %v205_v55 = vadd.f32 %v204_v54, %v182_v53 }
 0x1ba   :  { %207 = vst.msk [vmem:[#allocation2] sm:$0xff] %vm57_vm0, %v205_v55 }
 0x1bb   :  { %218 = dma.vmem_to_hbm [thread:$0]  %s214_s12, 128, %s216_s15, [#allocation3]  }
 0x1bc   :  { %272 = dma.done.wait [#allocation3], 128  }
 0x1bd   :  { %273 = vsyncadd [#allocation3], 4294967168 }
 0x1be   :  { %223 = vsyncpa [#allocation3], 1 }

</bundles_post_ra>
